<compile_context>
chip_gen: v7x
topology: tpu7x:2x2x1
jax: 0.10.0
libtpu: 0.0.40
codegen_flags: <defaults>
</compile_context>

<pallas_src>
import jax
import jax.numpy as jnp
from jax.experimental import pallas as pl
from jax.experimental.pallas import tpu as pltpu


_VMEM_LIMIT = 32 * 1024 * 1024  # conservative scoped-VMEM cap (fits v5e/v6e/v7x)


def _fit(dim, target):
    """Tile size: `target` if it evenly divides `dim`, else the full dim.

    `target` defaults are (8,128)-aligned; the full-dim fallback is always
    legal under the TPU BlockSpec rule (block dim == full array dim)."""
    return target if dim % target == 0 else dim


# --------------------------- tiled linear (+ bias) -------------------------- #

def _linear_kernel(x_ref, w_ref, b_ref, o_ref, acc_ref):
    @pl.when(pl.program_id(2) == 0)
    def _():
        acc_ref[...] = jnp.zeros_like(acc_ref)

    acc_ref[...] += jnp.dot(x_ref[...], w_ref[...],
                            preferred_element_type=jnp.float32)

    @pl.when(pl.program_id(2) == pl.num_programs(2) - 1)
    def _():
        o_ref[...] = (acc_ref[...] + b_ref[...]).astype(o_ref.dtype)


def linear(x2d, w_t, bias, out_dtype, tm=256, tn=256, tk=512):
    """x2d: (R, Cin) bf16, w_t: (Cin, Cout) bf16, bias: (Cout,) f32."""
    R, Cin = x2d.shape
    Cout = w_t.shape[1]
    tm, tn, tk = _fit(R, tm), _fit(Cout, tn), _fit(Cin, tk)
    bias2d = bias.reshape(1, Cout).astype(jnp.float32)
    grid = (R // tm, Cout // tn, Cin // tk)
    bytes_accessed = int(x2d.size * 2 + w_t.size * 2 + Cout * 4
                         + R * Cout * jnp.dtype(out_dtype).itemsize)
    return pl.pallas_call(
        _linear_kernel,
        out_shape=jax.ShapeDtypeStruct((R, Cout), out_dtype),
        grid=grid,
        in_specs=[
            pl.BlockSpec((tm, tk), lambda i, j, k: (i, k)),
            pl.BlockSpec((tk, tn), lambda i, j, k: (k, j)),
            pl.BlockSpec((1, tn), lambda i, j, k: (0, j)),
        ],
        out_specs=pl.BlockSpec((tm, tn), lambda i, j, k: (i, j)),
        scratch_shapes=[pltpu.VMEM((tm, tn), jnp.float32)],
        compiler_params=pltpu.CompilerParams(
            dimension_semantics=("parallel", "parallel", "arbitrary"),
            vmem_limit_bytes=_VMEM_LIMIT),
        cost_estimate=pl.CostEstimate(
            flops=2 * R * Cin * Cout,
            transcendentals=0,
            bytes_accessed=bytes_accessed),
    )(x2d, w_t, bias2d)


# ------------------- head-batched online-softmax attention ------------------ #

def _attn_kernel(q_ref, k_ref, v_ref, o_ref, m_sc, l_sc, acc_sc):
    kv = pl.program_id(2)

    @pl.when(kv == 0)
    def _():
        m_sc[...] = jnp.full_like(m_sc, -jnp.inf)
        l_sc[...] = jnp.zeros_like(l_sc)
        acc_sc[...] = jnp.zeros_like(acc_sc)

    # Softmax scale is already folded into the q projection weights.
    # Batched dot contracting on D: no explicit k transpose is materialized.
    s = jnp.einsum("hqd,hkd->hqk", q_ref[...], k_ref[...],
                   preferred_element_type=jnp.float32)
    m_new = jnp.maximum(m_sc[...], s.max(axis=-1, keepdims=True))
    alpha = jnp.exp(m_sc[...] - m_new)
    p = jnp.exp(s - m_new)
    l_sc[...] = alpha * l_sc[...] + p.sum(axis=-1, keepdims=True)
    acc_sc[...] = alpha * acc_sc[...] + jnp.einsum(
        "hqk,hkd->hqd", p.astype(v_ref.dtype), v_ref[...],
        preferred_element_type=jnp.float32)
    m_sc[...] = m_new

    @pl.when(kv == pl.num_programs(2) - 1)
    def _():
        o_ref[...] = (acc_sc[...] *
                      pl.reciprocal(l_sc[...], approx=True)).astype(o_ref.dtype)


def sdp_attention(q, k, v, hblk, tq=256, tkv=512):
    """q: (BH, N, D), k/v: (BH, M, D) -> (BH, N, D). Heads batched per step."""
    BH, N, D = q.shape
    M = k.shape[1]
    tq, tkv = _fit(N, tq), _fit(M, tkv)
    grid = (BH // hblk, N // tq, M // tkv)
    bytes_accessed = int((2 * BH * N * D + 2 * BH * M * D) * 2)
    return pl.pallas_call(
        _attn_kernel,
        out_shape=jax.ShapeDtypeStruct((BH, N, D), q.dtype),
        grid=grid,
        in_specs=[
            pl.BlockSpec((hblk, tq, D), lambda i, qi, kvi: (i, qi, 0)),
            pl.BlockSpec((hblk, tkv, D), lambda i, qi, kvi: (i, kvi, 0)),
            pl.BlockSpec((hblk, tkv, D), lambda i, qi, kvi: (i, kvi, 0)),
        ],
        out_specs=pl.BlockSpec((hblk, tq, D), lambda i, qi, kvi: (i, qi, 0)),
        scratch_shapes=[
            pltpu.VMEM((hblk, tq, 1), jnp.float32),   # running max m
            pltpu.VMEM((hblk, tq, 1), jnp.float32),   # running denom l
            pltpu.VMEM((hblk, tq, D), jnp.float32),   # output accumulator
        ],
        compiler_params=pltpu.CompilerParams(
            dimension_semantics=("parallel", "parallel", "arbitrary"),
            vmem_limit_bytes=_VMEM_LIMIT),
        cost_estimate=pl.CostEstimate(
            flops=4 * BH * N * M * D,
            transcendentals=BH * N * M,
            bytes_accessed=bytes_accessed),
    )(q, k, v)


# ------------------------------ module wrapper ------------------------------ #

def cross_attention(x, params, heads, context=None):
    """Forward pass equivalent to CrossAttention.forward (eval mode)."""
    B, N, Dq = x.shape
    ctx = x if context is None else context
    M, Dc = ctx.shape[1], ctx.shape[2]

    wq, wk, wv, wo, bo = (params[k] for k in ("wq", "wk", "wv", "wo", "bo"))
    inner_dim = wq.shape[0]
    dim_head = inner_dim // heads
    scale = float(dim_head) ** (-0.5)

    cdt = jnp.bfloat16
    # Fold the softmax scale into the q projection weights (free at runtime),
    # fuse k/v projections into one matmul, cast operands to bf16 once.
    wq_t = (wq * scale).T.astype(cdt)                          # (Dq, inner)
    wkv_t = jnp.concatenate([wk, wv], axis=0).T.astype(cdt)    # (Dc, 2*inner)
    wo_t = wo.T.astype(cdt)                                    # (inner, Dout)
    zeros_q = jnp.zeros((inner_dim,), jnp.float32)
    zeros_kv = jnp.zeros((2 * inner_dim,), jnp.float32)

    x_b = x.astype(cdt).reshape(B * N, Dq)
    c_b = ctx.astype(cdt).reshape(B * M, Dc)

    q_in = linear(x_b, wq_t, zeros_q, cdt).reshape(B, N, inner_dim)
    kv_in = linear(c_b, wkv_t, zeros_kv, cdt).reshape(B, M, 2 * inner_dim)

    # rearrange 'b n (h d) -> (b h) n d'
    q = q_in.reshape(B, N, heads, dim_head).transpose(0, 2, 1, 3).reshape(
        B * heads, N, dim_head)
    kv = kv_in.reshape(B, M, 2, heads, dim_head).transpose(2, 0, 3, 1, 4).reshape(
        2, B * heads, M, dim_head)
    k, v = kv[0], kv[1]
    # TODO(synk): write the attention output directly in 'b n (h d)' layout
    # (lane-dense stores, drops these XLA head transposes); kept in XLA here
    # for lowering safety on small dim_head.

    r1 = sdp_attention(q, k, v, hblk=heads)   # (B*heads, N, dim_head), bf16

    # rearrange '(b h) n d -> b n (h d)'
    r2 = r1.reshape(B, heads, N, dim_head).transpose(0, 2, 1, 3).reshape(
        B * N, inner_dim)

    out = linear(r2, wo_t, bo.astype(jnp.float32), jnp.float32).reshape(B, N, -1)
    # nn.Dropout(p=0.0) is identity in eval; the CUDA memory-stats slicing loop
    # is a GPU-only heuristic — the kv grid axis / online softmax plays that role.
    return out


# ---------------------------------- main ------------------------------------ #

if __name__ == "__main__":
    B, N, M = 2, 16, 8
    query_dim, context_dim = 32, 32
    heads, dim_head = 4, 16
    inner_dim = heads * dim_head

    key = jax.random.PRNGKey(0)
    kx, kc, k1, k2, k3, k4, k5 = jax.random.split(key, 7)

    x = jax.random.normal(kx, (B, N, query_dim), dtype=jnp.float32)
    context = jax.random.normal(kc, (B, M, context_dim), dtype=jnp.float32)

    # Deterministic parameter init (torch Linear shapes: weight (out, in))
    def init_w(k, shape, fan_in):
        bound = 1.0 / (fan_in ** 0.5)
        return jax.random.uniform(k, shape, jnp.float32, -bound, bound)

    params = {
        "wq": init_w(k1, (inner_dim, query_dim), query_dim),
        "wk": init_w(k2, (inner_dim, context_dim), context_dim),
        "wv": init_w(k3, (inner_dim, context_dim), context_dim),
        "wo": init_w(k4, (query_dim, inner_dim), inner_dim),
        "bo": init_w(k5, (query_dim,), inner_dim),
    }

    out = cross_attention(x, params, heads, context=context)
    out = jax.block_until_ready(out)

    # Pure-JAX f32 reference (kernel path uses bf16 operands -> loose tolerance)
    def ref_forward(x, ctx):
        q = x @ params["wq"].T
        k = ctx @ params["wk"].T
        v = ctx @ params["wv"].T

        def sh(t):
            b, n, _ = t.shape
            return t.reshape(b, n, heads, dim_head).transpose(0, 2, 1, 3)

        q, k, v = sh(q), sh(k), sh(v)
        s = jnp.einsum("bhid,bhjd->bhij", q, k) * (dim_head ** -0.5)
        p = jax.nn.softmax(s, axis=-1)
        o = jnp.einsum("bhij,bhjd->bhid", p, v)
        o = o.transpose(0, 2, 1, 3).reshape(x.shape[0], x.shape[1], inner_dim)
        return o @ params["wo"].T + params["bo"]

    ref = ref_forward(x, context)
    assert out.shape == (B, N, query_dim)
    assert jnp.allclose(out, ref, atol=5e-2, rtol=5e-2), "mismatch vs reference"

    print("KERNEL_OK")
</pallas_src>

<mosaic_0001>
module attributes {stable_mosaic.version = 11 : i64} {
  func.func @_linear_kernel(%arg0: i32, %arg1: i32, %arg2: i32, %arg3: memref<32x32xbf16, #tpu.memory_space<vmem>>, %arg4: memref<32x64xbf16, #tpu.memory_space<vmem>>, %arg5: memref<1x64xf32, #tpu.memory_space<vmem>>, %arg6: memref<32x64xbf16, #tpu.memory_space<vmem>>, %arg7: memref<32x64xf32, #tpu.memory_space<vmem>>) attributes {dimension_semantics = [#tpu.dimension_semantics<parallel>, #tpu.dimension_semantics<parallel>, #tpu.dimension_semantics<arbitrary>], iteration_bounds = array<i64: 1, 1, 1>, scalar_prefetch = 0 : i64, scratch_operands = 1 : i64, tpu.core_type = #tpu.core_type<tc>, window_params = [{transform_indices = @transform_0, window_bounds = array<i64: 32, 32>}, {transform_indices = @transform_1, window_bounds = array<i64: 32, 64>}, {transform_indices = @transform_2, window_bounds = array<i64: 1, 64>}, {transform_indices = @transform_3, window_bounds = array<i64: 32, 64>}]} {
    %c0_i32 = arith.constant 0 : i32
    %0 = arith.cmpi eq, %arg2, %c0_i32 : i32
    %1 = arith.extui %0 : i1 to i32
    %c0_i32_0 = arith.constant 0 : i32
    %2 = arith.cmpi ne, %1, %c0_i32_0 : i32
    scf.if %2 {
      %cst_10 = arith.constant 0.000000e+00 : f32
      %12 = vector.broadcast %cst_10 : f32 to vector<32x64xf32>
      %c0_11 = arith.constant 0 : index
      %c0_12 = arith.constant 0 : index
      %13 = vector.load %arg7[%c0_11, %c0_12] : memref<32x64xf32, #tpu.memory_space<vmem>>, vector<32x64xf32>
      tpu.vector_store %arg7[%c0_11, %c0_12], %12 {strides = array<i32>} : memref<32x64xf32, #tpu.memory_space<vmem>>, vector<32x64xf32>,
    } else {
    }
    %c0 = arith.constant 0 : index
    %c0_1 = arith.constant 0 : index
    %3 = vector.load %arg7[%c0, %c0_1] : memref<32x64xf32, #tpu.memory_space<vmem>>, vector<32x64xf32>
    %c0_2 = arith.constant 0 : index
    %c0_3 = arith.constant 0 : index
    %4 = vector.load %arg3[%c0_2, %c0_3] : memref<32x32xbf16, #tpu.memory_space<vmem>>, vector<32x32xbf16>
    %c0_4 = arith.constant 0 : index
    %c0_5 = arith.constant 0 : index
    %5 = vector.load %arg4[%c0_4, %c0_5] : memref<32x64xbf16, #tpu.memory_space<vmem>>, vector<32x64xbf16>
    %cst = arith.constant dense<0.000000e+00> : vector<32x64xf32>
    %6 = tpu.matmul %4, %5, %cst {dimension_numbers = #tpu.dot_dimension_numbers<[1], [0], [0], [1], [0, 0, 1, 1], [], []>} : vector<32x32xbf16>, vector<32x64xbf16>, vector<32x64xf32> -> vector<32x64xf32>
    %7 = arith.addf %3, %6 : vector<32x64xf32>
    %c0_6 = arith.constant 0 : index
    %c0_7 = arith.constant 0 : index
    %8 = vector.load %arg7[%c0_6, %c0_7] : memref<32x64xf32, #tpu.memory_space<vmem>>, vector<32x64xf32>
    tpu.vector_store %arg7[%c0_6, %c0_7], %7 {strides = array<i32>} : memref<32x64xf32, #tpu.memory_space<vmem>>, vector<32x64xf32>,
    %c0_i32_8 = arith.constant 0 : i32
    %9 = arith.cmpi eq, %arg2, %c0_i32_8 : i32
    %10 = arith.extui %9 : i1 to i32
    %c0_i32_9 = arith.constant 0 : i32
    %11 = arith.cmpi ne, %10, %c0_i32_9 : i32
    scf.if %11 {
      %c0_10 = arith.constant 0 : index
      %c0_11 = arith.constant 0 : index
      %12 = vector.load %arg7[%c0_10, %c0_11] : memref<32x64xf32, #tpu.memory_space<vmem>>, vector<32x64xf32>
      %c0_12 = arith.constant 0 : index
      %c0_13 = arith.constant 0 : index
      %13 = vector.load %arg5[%c0_12, %c0_13] : memref<1x64xf32, #tpu.memory_space<vmem>>, vector<1x64xf32>
      %14 = vector.broadcast %13 : vector<1x64xf32> to vector<32x64xf32>
      %15 = arith.addf %12, %14 : vector<32x64xf32>
      %16 = arith.truncf %15 : vector<32x64xf32> to vector<32x64xbf16>
      %c0_14 = arith.constant 0 : index
      %c0_15 = arith.constant 0 : index
      %17 = vector.load %arg6[%c0_14, %c0_15] : memref<32x64xbf16, #tpu.memory_space<vmem>>, vector<32x64xbf16>
      tpu.vector_store %arg6[%c0_14, %c0_15], %16 {strides = array<i32>} : memref<32x64xbf16, #tpu.memory_space<vmem>>, vector<32x64xbf16>,
    } else {
    }
    return
  }
  func.func @transform_0(%arg0: i32, %arg1: i32, %arg2: i32) -> (i32, i32) {
    %c0_i32 = arith.constant 0 : i32
    return %arg0, %arg2 : i32, i32
  }
  func.func @transform_1(%arg0: i32, %arg1: i32, %arg2: i32) -> (i32, i32) {
    %c0_i32 = arith.constant 0 : i32
    return %arg2, %arg1 : i32, i32
  }
  func.func @transform_2(%arg0: i32, %arg1: i32, %arg2: i32) -> (i32, i32) {
    %c0_i32 = arith.constant 0 : i32
    %c0_i32_0 = arith.constant 0 : i32
    return %c0_i32, %arg1 : i32, i32
  }
  func.func @transform_3(%arg0: i32, %arg1: i32, %arg2: i32) -> (i32, i32) {
    %c0_i32 = arith.constant 0 : i32
    return %arg0, %arg1 : i32, i32
  }
}

</mosaic_0001>

<bundles_post_ra>
// kernel: tpu_custom_call.1
= control target key start
LH: loop header
LB: loop body
LE: loop exit
PB: predicated region body
PF: predicated region fallthrough
CT: control target
= control target key end

     0   :  { %8 = vsyncpa [#allocation4], 0  ;;  %s400_s0 = inlined_call_operand.hbm [shape: bf16[32,32], index: 0, kind: input, shape index: {}]   ;;  %s401_s1 = inlined_call_operand.hbm [shape: bf16[32,64], index: 1, kind: input, shape index: {}]   ;;  %s402_s2 = inlined_call_operand.vmem [shape: f32[1,64], index: 2, kind: input, shape index: {}]   ;;  %s403_s3 = inlined_call_operand.hbm [shape: bf16[32,64], index: 3, kind: output, shape index: {}]  }
   0x1   :  { %9 = vsyncpa [#allocation7], 0 }
   0x2   :  { %10 = vsyncpa [#allocation5], 0  ;;  %s318_s12 = smov [#allocation3]   ;;  %s246_s16 = scalar_lea.hbm %s400_s0, 256 }
   0x3   :  { %s16_s13 = sshll.u32 %s318_s12, 4  ;;  %p247_p0 = scmp.ne.s32.totalorder %s400_s0, %s246_s16  ;;  %s17_s13 = int_to_ptr.vmem [resolvable:$true] %s16_s13 }
   0x4   :  { %p250_p1 = scmp.lt.u32.totalorder %s246_s16, %s400_s0 }
   0x6   :  { %p252_p2 = pnand %p250_p1, %p247_p0 }
   0x8   :  { %255 = shalt.err (!%p252_p2)
}
   0x9   :  { %s256_s21 = scalar_lea.vmem %s17_s13, 256  ;;  %p261_p4 = scmp.lt.s32.totalorder %s17_s13, %s17_s13 }
   0xa   :  { %p257_p3 = scmp.ne.s32.totalorder %s17_s13, %s256_s21  ;;  %p262_p5 = scmp.lt.s32.totalorder %s256_s21, %s256_s21 }
   0xc   :  { %p263_p6 = por %p262_p5, %p261_p4 }
   0xe   :  { %p264_p7 = pnand %p263_p6, %p257_p3 }
  0x10   :  { %267 = shalt.err (!%p264_p7)
}
  0x11   :  { %s319_s22 = smov 64   ;;  %s320_s23 = smov 4  }
  0x12   :  { %22 = dma.hbm_to_vmem [thread:$0]  %s400_s0, 256, %s17_s13, [#allocation4], %s319_s22, %s319_s22, %s320_s23  }
  0x13   :  { %s321_s26 = smov [#allocation6]   ;;  %s268_s30 = scalar_lea.hbm %s401_s1, 256 }
  0x14   :  { %s28_s27 = sshll.u32 %s321_s26, 4  ;;  %p269_p8 = scmp.ne.s32.totalorder %s401_s1, %s268_s30  ;;  %s29_s27 = int_to_ptr.vmem [resolvable:$true] %s28_s27 }
  0x15   :  { %p272_p9 = scmp.lt.u32.totalorder %s268_s30, %s401_s1 }
  0x17   :  { %p274_p10 = pnand %p272_p9, %p269_p8 }
  0x19   :  { %277 = shalt.err (!%p274_p10)
}
  0x1a   :  { %s278_s8 = scalar_lea.vmem %s29_s27, 256  ;;  %p283_p12 = scmp.lt.s32.totalorder %s29_s27, %s29_s27 }
  0x1b   :  { %p279_p11 = scmp.ne.s32.totalorder %s29_s27, %s278_s8  ;;  %p284_p13 = scmp.lt.s32.totalorder %s278_s8, %s278_s8 }
  0x1d   :  { %p285_p0 = por %p284_p13, %p283_p12 }
  0x1f   :  { %p286_p1 = pnand %p285_p0, %p279_p11 }
  0x21   :  { %289 = shalt.err (!%p286_p1)
}
  0x22   :  { %34 = dma.hbm_to_vmem [thread:$0]  %s401_s1, 256, %s29_s27, [#allocation7], %s319_s22, %s319_s22, %s320_s23  }
  0x23   :  { %312 = dma.done.wait [#allocation4], 256  }
  0x24   :  { %313 = vsyncadd [#allocation4], 4294967040 }
  0x25   :  { %314 = dma.done.wait [#allocation7], 256  }
  0x26   :  { %315 = vsyncadd [#allocation7], 4294967040  ;;  %vm48_vm0 = vcmask 523264   ;;  %v322_v0 = vmov 0.0   ;;  %v242_v1 = vld [vmem:[#allocation6] sm:$0xff]   ;;  %v243_v2 = vld [vmem:[#allocation6 + $0x8] sm:$0xff]  }
  0x27   :  { %51 = vst.msk [vmem:[#allocation2 + $0x10] sm:$0xff] %vm48_vm0, %v322_v0  ;;  %49 = vst.msk [vmem:[#allocation2] sm:$0xff] %vm48_vm0, %v322_v0  ;;  %vm87_vm1 = vcmask 261120   ;;  %228 = vmatprep.subr.bf16.mxu0 %v242_v1  ;;  %v244_v3 = vld [vmem:[#allocation3] sm:$0xff]   ;;  %v245_v4 = vld [vmem:[#allocation3 + $0x8] sm:$0xff]   ;;  %vm186_vm2 = vcmask 519168  }
  0x28   :  { %50 = vst.msk [vmem:[#allocation2 + $0x8] sm:$0xff] %vm48_vm0, %v322_v0  ;;  %52 = vst.msk [vmem:[#allocation2 + $0x18] sm:$0xff] %vm48_vm0, %v322_v0  ;;  %229 = vmatpush3.bf16.msra.mxu0 %v242_v1  ;;  %232 = vmatprep.mubr.msk.bf16.mxu0 %vm87_vm1, %v244_v3  ;;  %v215_v17 = vld [vmem:[%s402_s2] ss:$0 sm:$0xff]  ;;  %s323_s11 = smov [#allocation8]  }
  0x29   :  { %230 = vmatprep.subr.bf16.mxu0 %v243_v2  ;;  %s196_s12 = sshll.u32 %s323_s11, 4  ;;  %s197_s12 = int_to_ptr.vmem [resolvable:$true] %s196_s12 }
  0x2a   :  { %s290_s2 = scalar_lea.vmem %s197_s12, 256  ;;  %p295_p3 = scmp.lt.s32.totalorder %s197_s12, %s197_s12 }
  0x2b   :  { %p291_p2 = scmp.ne.s32.totalorder %s197_s12, %s290_s2  ;;  %p296_p4 = scmp.lt.s32.totalorder %s290_s2, %s290_s2 }
  0x2c   :  { %231 = vmatpush3.bf16.msra.mxu0 %v243_v2 }
  0x2d   :  { %p297_p5 = por %p296_p4, %p295_p3 }
  0x2e   :  { %v55_v5 = vld [vmem:[#allocation2 + $0x10] sm:$0xff]  ;;  %v53_v6 = vld [vmem:[#allocation2] sm:$0xff] }
  0x2f   :  { %233 = vmatmul.mubr.msk.bf16.vlgmr.msra.gmra.mrb[0].mxu0 %vm87_vm1, %v245_v4  ;;  %v56_v8 = vld [vmem:[#allocation2 + $0x18] sm:$0xff]  ;;  %v54_v11 = vld [vmem:[#allocation2 + $0x8] sm:$0xff]  ;;  %p298_p6 = pnand %p297_p5, %p291_p2 }
 0x102   :  { %v234_v7 = vpop.f32.mrb[0].mxu0 }
 0x103   :  { %v145_v9 = vadd.f32 %v234_v7, %v55_v5  ;;  %v128_v10 = vpop.f32.mrb[1].mxu0 }
 0x104   :  { %v143_v12 = vadd.f32 %v128_v10, %v53_v6  ;;  %v235_v13 = vpop.f32.mrb[2].mxu0 }
 0x105   :  { %150 = vst.msk [vmem:[#allocation2 + $0x10] sm:$0xff] %vm48_vm0, %v145_v9  ;;  %v146_v14 = vadd.f32 %v235_v13, %v56_v8  ;;  %v131_v15 = vpop.f32.mrb[3].mxu0 }
 0x106   :  { %148 = vst.msk [vmem:[#allocation2] sm:$0xff] %vm48_vm0, %v143_v12  ;;  %v144_v16 = vadd.f32 %v131_v15, %v54_v11 }
 0x107   :  { %151 = vst.msk [vmem:[#allocation2 + $0x18] sm:$0xff] %vm48_vm0, %v146_v14 }
 0x108   :  { %149 = vst.msk [vmem:[#allocation2 + $0x8] sm:$0xff] %vm48_vm0, %v144_v16 }
 0x10c   :  { %v157_v18 = vld [vmem:[#allocation2 + $0x10] sm:$0xff] }
 0x10d   :  { %v155_v19 = vld [vmem:[#allocation2] sm:$0xff]  ;;  %v168_v20 = vadd.f32 %v215_v17, %v157_v18 }
 0x10e   :  { %v158_v21 = vld [vmem:[#allocation2 + $0x18] sm:$0xff]  ;;  %v166_v22 = vadd.f32 %v215_v17, %v155_v19 }
 0x10f   :  { %v156_v23 = vld [vmem:[#allocation2 + $0x8] sm:$0xff]  ;;  %v169_v24 = vadd.f32 %v215_v17, %v158_v21  ;;  %v222_v25 = vpack.c.bf16 %v168_v20, %v168_v20 }
 0x110   :  { %v167_v26 = vadd.f32 %v215_v17, %v156_v23  ;;  %v220_v27 = vpack.c.bf16 %v166_v22, %v166_v22 }
 0x111   :  { %v223_v28 = vpack.c.bf16 %v169_v24, %v169_v24  ;;  %189 = vst.msk [vmem:[#allocation8 + $0x8] sm:$0xf] %vm186_vm2, %v222_v25 }
 0x112   :  { %v221_v29 = vpack.c.bf16 %v167_v26, %v167_v26  ;;  %187 = vst.msk [vmem:[#allocation8] sm:$0xf] %vm186_vm2, %v220_v27 }
 0x113   :  { %190 = vst.msk [vmem:[#allocation8 + $0xc] sm:$0xf] %vm186_vm2, %v223_v28 }
 0x114   :  { %188 = vst.msk [vmem:[#allocation8 + $0x4] sm:$0xf] %vm186_vm2, %v221_v29 }
 0x115   :  { %301 = shalt.err (!%p298_p6)
}
 0x116   :  { %s302_s15 = scalar_lea.hbm %s403_s3, 256 }
 0x117   :  { %p303_p7 = scmp.ne.s32.totalorder %s403_s3, %s302_s15  ;;  %p306_p8 = scmp.lt.u32.totalorder %s302_s15, %s403_s3 }
 0x119   :  { %p308_p9 = pnand %p306_p8, %p303_p7 }
 0x11b   :  { %311 = shalt.err (!%p308_p9)
}
 0x11c   :  { %202 = dma.vmem_to_hbm [thread:$0]  %s197_s12, 256, %s403_s3, [#allocation5], %s319_s22, %s319_s22, %s320_s23  }
 0x11d   :  { %316 = dma.done.wait [#allocation5], 256  }
 0x11e   :  { %317 = vsyncadd [#allocation5], 4294967040 }
 0x11f   :  { %206 = vsyncpa [#allocation4], 1 }
 0x120   :  { %207 = vsyncpa [#allocation7], 1 }
 0x121   :  { %208 = vsyncpa [#allocation5], 1 }

</bundles_post_ra>
